<compile_context>
chip_gen: v7x
topology: tpu7x:2x2x1
jax: 0.10.0
libtpu: 0.0.40
codegen_flags: <defaults>
</compile_context>

<pallas_src>
import functools

import jax
import jax.numpy as jnp
from jax import lax
from jax.experimental import pallas as pl
from jax.experimental.pallas import tpu as pltpu


def _alphamix_kernel(r_ref, t1_ref, t2_ref, out_ref, *,
                     alpha, tw, n_chunks, mm_dtype, precision):
    w1 = jnp.float32(1.0 - alpha)
    w2 = jnp.float32(alpha)

    x = t1_ref[...]                      # (tm, W) source rows
    if x.dtype != mm_dtype:
        x = x.astype(mm_dtype)
    R = r_ref[...]                       # (tw, 2*tw) 0/1 expansion matrix, resident

    # Lane duplication up[:, l] = x[:, l // 2] as (chunked) batched MXU matmuls.
    # Chunking keeps the contraction <= 128 so the MXU time stays hidden under
    # the HBM DMA on every generation (incl. v5e / f32 HIGHEST).
    up_chunks = []
    for c in range(n_chunks):
        xc = x if n_chunks == 1 else x[:, c * tw:(c + 1) * tw]
        up_chunks.append(
            w1 * jnp.dot(xc, R, precision=precision,
                         preferred_element_type=jnp.float32))

    # H duplication is free: kernel output row m = [out row 2i | out row 2i+1],
    # both blended against the same upsampled source row.
    up2 = jnp.concatenate(up_chunks * 2, axis=-1)            # (tm, 4W) f32
    out_ref[...] = (up2 + w2 * t2_ref[...].astype(jnp.float32)).astype(out_ref.dtype)


def _row_alignment(dtype):
    itemsize = jnp.dtype(dtype).itemsize
    return max(8, 8 * (4 // max(1, itemsize)))     # f32: 8, bf16: 16, int8/fp8: 32


def _vmem_params():
    """Generation-aware VMEM budget for the per-step working set + scoped limit."""
    cap = 64 * 1024 * 1024                          # conservative fallback (v7x per-TC)
    try:
        cap = int(pltpu.get_tpu_info().vmem_capacity_bytes)
    except Exception:
        pass
    budget = max(8 * 1024 * 1024, cap // 4)         # ~32 MiB on v5e/v6e, ~16 MiB on v7x
    limit = max(32 * 1024 * 1024, (cap * 7) // 10)  # ~90 MiB on v5e/v6e, ~45 MiB on v7x
    return budget, limit


def _pick_chunk_width(W):
    """Contraction chunk for the expansion matmul (must divide W)."""
    if W <= 128:
        return W
    for cand in (128, 64):
        if W % cand == 0:
            return cand
    return W                                        # rare: accept one big contraction


def _pick_row_tile(M, W, itemsize, budget, row_align):
    """Rows per grid step: big (amortize ~0.35us step overhead), aligned, VMEM-budgeted."""
    # Double-buffered t1 + t2 + out blocks plus f32 temps for the upsampled rows.
    per_row = 2 * 9 * W * itemsize + 12 * W * 4
    tm = budget // per_row
    tm = min(tm, 4096)
    tm = (tm // row_align) * row_align
    if tm <= 0:
        tm = min(M, row_align)
    if tm >= M:
        # Whole problem fits in one step: split in two so both v7x TensorCores
        # get a block (only when that still yields aligned, evenly-divided tiles).
        if M % (2 * row_align) == 0:
            return M // 2
        return M
    # Prefer a tile that divides M so the tail block is not masked.
    t = tm
    while t >= row_align:
        if M % t == 0:
            return t
        t -= row_align
    return tm                                       # ragged tail handled by Pallas masking


def alpha_mix(t1, t2, alpha: float):
    """Equivalent of AlphaMix(alpha)(t1, t2) for NCHW float inputs."""
    assert t1.shape[-1] * 2 == t2.shape[-1]
    N, C, H, W = t1.shape
    assert t2.shape == (N, C, 2 * H, 2 * W)
    assert t1.dtype == t2.dtype
    dtype = t1.dtype
    itemsize = jnp.dtype(dtype).itemsize

    M = N * C * H
    # Free, contiguous leading-dim reshapes (no HBM traffic, no transposes):
    #   t1 (N,C,H,W)   -> (M, W)
    #   t2 (N,C,2H,2W) -> (M, 4W)   row m = [output row 2i | output row 2i+1]
    t1f = t1.reshape(M, W)
    t2f = t2.reshape(M, 4 * W)

    tw = _pick_chunk_width(W)
    n_chunks = W // tw

    if dtype == jnp.bfloat16:
        mm_dtype, precision = jnp.bfloat16, None            # single-pass bf16 MXU, exact
    else:
        mm_dtype, precision = jnp.float32, lax.Precision.HIGHEST  # exact f32 upsample

    # 0/1 lane-expansion matrix: R[j, k] = (k // 2 == j)  =>  (x @ R)[l] = x[l // 2].
    # Built once per call; kept VMEM-resident via the constant index_map below.
    j = jnp.arange(tw, dtype=jnp.int32)[:, None]
    k = jnp.arange(2 * tw, dtype=jnp.int32)[None, :]
    R = (k // 2 == j).astype(mm_dtype)

    row_align = _row_alignment(dtype)
    budget, vmem_limit = _vmem_params()
    tm = _pick_row_tile(M, W, itemsize, budget, row_align)
    grid = (pl.cdiv(M, tm),)

    kernel = functools.partial(
        _alphamix_kernel, alpha=float(alpha), tw=tw, n_chunks=n_chunks,
        mm_dtype=mm_dtype, precision=precision)

    out_elems = M * 4 * W
    cost = pl.CostEstimate(
        flops=2 * M * (2 * W) * tw + 3 * out_elems,          # expansion matmul + blend
        transcendentals=0,
        bytes_accessed=(M * W + 2 * out_elems) * itemsize
        + 2 * tw * tw * jnp.dtype(mm_dtype).itemsize,
    )

    outf = pl.pallas_call(
        kernel,
        out_shape=jax.ShapeDtypeStruct((M, 4 * W), dtype),
        grid=grid,
        in_specs=[
            pl.BlockSpec((tw, 2 * tw), lambda m: (0, 0)),    # R: fetched once, resident
            pl.BlockSpec((tm, W), lambda m: (m, 0)),
            pl.BlockSpec((tm, 4 * W), lambda m: (m, 0)),
        ],
        out_specs=pl.BlockSpec((tm, 4 * W), lambda m: (m, 0)),
        compiler_params=pltpu.CompilerParams(
            dimension_semantics=("parallel",),
            vmem_limit_bytes=vmem_limit,
        ),
        cost_estimate=cost,
    )(R, t1f, t2f)

    return outf.reshape(N, C, 2 * H, 2 * W)


def _reference(t1, t2, alpha):
    # Pure-JAX reference: F.interpolate(scale_factor=2, mode='nearest') + blend.
    up = jnp.repeat(jnp.repeat(t1, 2, axis=-2), 2, axis=-1)
    return (1.0 - alpha) * up + alpha * t2


if __name__ == "__main__":
    alpha = 0.3
    key = jax.random.PRNGKey(0)
    k1, k2 = jax.random.split(key)

    N, C, H, W = 2, 4, 16, 16
    t1 = jax.random.normal(k1, (N, C, H, W), dtype=jnp.float32)
    t2 = jax.random.normal(k2, (N, C, 2 * H, 2 * W), dtype=jnp.float32)

    mix = jax.jit(functools.partial(alpha_mix, alpha=alpha))
    out = jax.block_until_ready(mix(t1, t2))

    ref = _reference(t1, t2, alpha)
    assert out.shape == (N, C, 2 * H, 2 * W)
    max_err = float(jnp.max(jnp.abs(out - ref)))
    assert jnp.allclose(out, ref, atol=1e-5, rtol=1e-5), max_err

    print("KERNEL_OK")
</pallas_src>

<mosaic_0001>
module attributes {stable_mosaic.version = 11 : i64} {
  func.func @_alphamix_kernel(%arg0: i32, %arg1: memref<16x32xf32, #tpu.memory_space<vmem>>, %arg2: memref<64x16xf32, #tpu.memory_space<vmem>>, %arg3: memref<64x64xf32, #tpu.memory_space<vmem>>, %arg4: memref<64x64xf32, #tpu.memory_space<vmem>>) attributes {dimension_semantics = [#tpu.dimension_semantics<parallel>], iteration_bounds = array<i64: 2>, scalar_prefetch = 0 : i64, scratch_operands = 0 : i64, tpu.core_type = #tpu.core_type<tc>, window_params = [{pipeline_mode = #tpu.pipeline_mode<synchronous>, transform_indices = @transform_0, window_bounds = array<i64: 16, 32>}, {transform_indices = @transform_1, window_bounds = array<i64: 64, 16>}, {transform_indices = @transform_2, window_bounds = array<i64: 64, 64>}, {transform_indices = @transform_3, window_bounds = array<i64: 64, 64>}]} {
    %c0 = arith.constant 0 : index
    %c0_0 = arith.constant 0 : index
    %0 = vector.load %arg2[%c0, %c0_0] : memref<64x16xf32, #tpu.memory_space<vmem>>, vector<64x16xf32>
    %c0_1 = arith.constant 0 : index
    %c0_2 = arith.constant 0 : index
    %1 = vector.load %arg1[%c0_1, %c0_2] : memref<16x32xf32, #tpu.memory_space<vmem>>, vector<16x32xf32>
    %cst = arith.constant dense<0.000000e+00> : vector<64x32xf32>
    %2 = tpu.matmul %0, %1, %cst {dimension_numbers = #tpu.dot_dimension_numbers<[1], [0], [0], [1], [0, 0, 1, 1], [], []>, precision = #tpu.contract_precision<fp32>} : vector<64x16xf32>, vector<16x32xf32>, vector<64x32xf32> -> vector<64x32xf32>
    %cst_3 = arith.constant 0.699999988 : f32
    %3 = vector.broadcast %cst_3 : f32 to vector<64x32xf32>
    %4 = arith.mulf %3, %2 : vector<64x32xf32>
    %5 = tpu.concatenate %4, %4 in 1 : vector<64x32xf32>, vector<64x32xf32> -> vector<64x64xf32>
    %c0_4 = arith.constant 0 : index
    %c0_5 = arith.constant 0 : index
    %6 = vector.load %arg3[%c0_4, %c0_5] : memref<64x64xf32, #tpu.memory_space<vmem>>, vector<64x64xf32>
    %cst_6 = arith.constant 3.000000e-01 : f32
    %7 = vector.broadcast %cst_6 : f32 to vector<64x64xf32>
    %8 = arith.mulf %7, %6 : vector<64x64xf32>
    %9 = arith.addf %5, %8 : vector<64x64xf32>
    %c0_7 = arith.constant 0 : index
    %c0_8 = arith.constant 0 : index
    %10 = vector.load %arg4[%c0_7, %c0_8] : memref<64x64xf32, #tpu.memory_space<vmem>>, vector<64x64xf32>
    tpu.vector_store %arg4[%c0_7, %c0_8], %9 {strides = array<i32>} : memref<64x64xf32, #tpu.memory_space<vmem>>, vector<64x64xf32>,
    return
  }
  func.func @transform_0(%arg0: i32) -> (i32, i32) {
    %c0_i32 = arith.constant 0 : i32
    %c0_i32_0 = arith.constant 0 : i32
    %c0_i32_1 = arith.constant 0 : i32
    return %c0_i32, %c0_i32_0 : i32, i32
  }
  func.func @transform_1(%arg0: i32) -> (i32, i32) {
    %c0_i32 = arith.constant 0 : i32
    %c0_i32_0 = arith.constant 0 : i32
    return %arg0, %c0_i32 : i32, i32
  }
  func.func @transform_2(%arg0: i32) -> (i32, i32) {
    %c0_i32 = arith.constant 0 : i32
    %c0_i32_0 = arith.constant 0 : i32
    return %arg0, %c0_i32 : i32, i32
  }
  func.func @transform_3(%arg0: i32) -> (i32, i32) {
    %c0_i32 = arith.constant 0 : i32
    %c0_i32_0 = arith.constant 0 : i32
    return %arg0, %c0_i32 : i32, i32
  }
}

</mosaic_0001>

<bundles_post_ra>
// kernel: alpha_mix.1
= control target key start
LH: loop header
LB: loop body
LE: loop exit
PB: predicated region body
PF: predicated region fallthrough
CT: control target
= control target key end

     0   :  { %s1412_s12 = smov 0   ;;  %s1588_s0 = inlined_call_operand.vmem [shape: f32[16,32], index: 0, kind: input, shape index: {}]   ;;  %s1589_s1 = inlined_call_operand.vmem [shape: f32[128,16], index: 1, kind: input, shape index: {}]   ;;  %s1590_s2 = inlined_call_operand.vmem [shape: f32[128,64], index: 2, kind: input, shape index: {}]   ;;  %s1591_s3 = inlined_call_operand.vmem [shape: f32[128,64], index: 3, kind: output, shape index: {}]  }
   0x1 LB: > { %s1141_s13 = sadd.s32 4294967295, %s1389_s12   ;;  %p1145_p0 = scmp.ge.s32.totalorder %s1389_s12, 1  ;;  %s1389_s12 = sphi %s1412_s12, %s13_s12  }
   0x2   : > { %p149_p1 = scmp.lt.s32.totalorder %s1389_s12, 3 }
   0x4   : > { %p150_p2 = pnand %p1145_p0, %p149_p1 }
   0x5   : > { %v204_v0 = vld [vmem:[%s1588_s0] sm:$0xff] (!%p150_p2)  ;;  %v205_v1 = vld [vmem:[%s1588_s0 + $0x8] sm:$0xff] (!%p150_p2)  ;;  %s1146_s18 = sshll.u32 (!%p150_p2), %s1141_s13, 3  ;;  %vm206_vm0 = vcmask (!%p150_p2), 130048   ;;  %s1391_s23 = smov (!%p150_p2), 32   ;;  %vm1031_vm1 = vcmask (!%p150_p2), 261120  }
   0x6   : > { %153 = sbr.rel (%p150_p2) target bundleno = 412 (0x19c), region = 32  ;;  %v232_v2 = vand.u32 (!%p150_p2), 4294901760, %v204_v0  ;;  %v235_v3 = vand.u32 (!%p150_p2), 4294901760, %v205_v1  ;;  %p179_p3 = scmp.lt.s32.totalorder (!%p150_p2), %s1146_s18, 15  ;;  %vm1064_vm2 = vcmask (!%p150_p2), 523264  }
   0x8   : > { %v1426_v4 = vpack.c.bf16 (!%p150_p2), %v235_v3, %v232_v2  ;;  %v1428_v5 = vsub.f32 (!%p150_p2), %v204_v0, %v232_v2  ;;  %v1430_v6 = vsub.f32 (!%p150_p2), %v205_v1, %v235_v3 }
   0xa   : > { %1323 = vmatprep.subr.bf16.mxu0 (!%p150_p2), %v1426_v4  ;;  %1311 = vmatprep.subr.bf16.mxu1 (!%p150_p2), %v1426_v4  ;;  %v381_v7 = vand.u32 (!%p150_p2), 4294901760, %v1428_v5  ;;  %v388_v8 = vand.u32 (!%p150_p2), 4294901760, %v1430_v6  ;;  %v1318_v62 = vpack.c.bf16 (!%p150_p2), %v1430_v6, %v1428_v5 }
   0xb   : > { %1325 = vmatpush3.bf16.msra.mxu0 (!%p150_p2), %v1426_v4  ;;  %1313 = vmatpush3.bf16.msra.mxu1 (!%p150_p2), %v1426_v4 }
   0xc   : > { %v382_v11 = vsub.f32 (!%p150_p2), %v1428_v5, %v381_v7  ;;  %v389_v12 = vsub.f32 (!%p150_p2), %v1430_v6, %v388_v8  ;;  %v1326_v14 = vpack.c.bf16 (!%p150_p2), %v388_v8, %v381_v7 }
   0xd   : > { %s1593_s18 = smov (!%p179_p3, %s1146_s18), 15 }
   0xe   : > { %s1434_s19 = sshll.u32 %s1593_s18, 3  ;;  %v383_v23 = vand.u32 4294901760, %v382_v11  ;;  %v390_v24 = vand.u32 4294901760, %v389_v12  ;;  %1327 = vmatprep.subr.bf16.mxu0 %v1326_v14 }
   0xf   : > { %s182_s22 = scalar_lea.vmem %s1589_s1, %s1434_s19  ;;  %s1545_s26 = scalar_lea.vmem %s1590_s2, %s1434_s19 }
  0x10   : > { %v196_v9 = vld [vmem:[%s182_s22] sm:$0xff]  ;;  %v197_v10 = vld [vmem:[%s182_s22 + $0x8] sm:$0xff]  ;;  %v198_v13 = vld [vmem:[%s182_s22 + $0x10] sm:$0xff]  ;;  %v1314_v32 = vpack.c.bf16 %v390_v24, %v383_v23  ;;  %s1554_s29 = scalar_lea.vmem %s1591_s3, %s1434_s19 }
  0x11   : > { %v208_v15 = vsel %vm206_vm0, %v196_v9, 0  ;;  %v211_v16 = vsel %vm206_vm0, %v197_v10, 0  ;;  %v214_v17 = vsel %vm206_vm0, %v198_v13, 0  ;;  %v199_v18 = vld [vmem:[%s182_s22 + $0x18] sm:$0xff]  ;;  %v200_v19 = vld [vmem:[%s182_s22 + $0x20] sm:$0xff]  ;;  %v201_v20 = vld [vmem:[%s182_s22 + $0x28] sm:$0xff] }
  0x12   : > { %v1449_v21 = vand.u32 4294901760, %v208_v15  ;;  %v1451_v22 = vand.u32 4294901760, %v211_v16  ;;  %v202_v25 = vld [vmem:[%s182_s22 + $0x30] sm:$0xff]  ;;  %v1453_v26 = vand.u32 4294901760, %v214_v17  ;;  %v217_v27 = vsel %vm206_vm0, %v199_v18, 0  ;;  %v203_v34 = vld [vmem:[%s182_s22 + $0x38] sm:$0xff]  ;;  %1315 = vmatprep.subr.bf16.mxu1 %v1314_v32 }
  0x13   : > { %v220_v28 = vsel %vm206_vm0, %v200_v19, 0  ;;  %v223_v29 = vsel %vm206_vm0, %v201_v20, 0  ;;  %v1464_v33 = vand.u32 4294901760, %v217_v27  ;;  %v226_v38 = vsel %vm206_vm0, %v202_v25, 0 }
  0x14   : > { %v1459_v30 = vsub.f32 %v208_v15, %v1449_v21  ;;  %v1462_v31 = vsub.f32 %v211_v16, %v1451_v22  ;;  %v1467_v35 = vsub.f32 %v214_v17, %v1453_v26  ;;  %v1469_v36 = vand.u32 4294901760, %v220_v28 }
  0x15   : > { %v1471_v37 = vand.u32 4294901760, %v223_v29  ;;  %v1477_v41 = vsub.f32 %v217_v27, %v1464_v33  ;;  %v1479_v42 = vand.u32 4294901760, %v226_v38  ;;  %v229_v46 = vsel %vm206_vm0, %v203_v34, 0 }
  0x16   : > { %v300_v39 = vand.u32 4294901760, %v1459_v30  ;;  %v310_v40 = vand.u32 4294901760, %v1462_v31  ;;  %v320_v43 = vand.u32 4294901760, %v1467_v35  ;;  %v1483_v44 = vsub.f32 %v220_v28, %v1469_v36 }
  0x17   : > { %v1486_v45 = vsub.f32 %v223_v29, %v1471_v37  ;;  %v330_v49 = vand.u32 4294901760, %v1477_v41  ;;  %v1493_v50 = vsub.f32 %v226_v38, %v1479_v42  ;;  %v1498_v54 = vand.u32 4294901760, %v229_v46 }
  0x18   : > { %1266 = vmatprep.mubr.f32.mxu0 %v300_v39  ;;  %v301_v47 = vsub.f32 %v1459_v30, %v300_v39  ;;  %v311_v48 = vsub.f32 %v1462_v31, %v310_v40  ;;  %v321_v51 = vsub.f32 %v1467_v35, %v320_v43  ;;  %v340_v52 = vand.u32 4294901760, %v1483_v44 }
  0x19   : > { %1267 = vmatmul.mubr.f32.vlgmr.msra.gmra.mrb[0].mxu0 %v310_v40  ;;  %v350_v53 = vand.u32 4294901760, %v1486_v45  ;;  %v331_v57 = vsub.f32 %v1477_v41, %v330_v49  ;;  %v360_v58 = vand.u32 4294901760, %v1493_v50  ;;  %v369_v61 = vsub.f32 %v229_v46, %v1498_v54  ;;  %v1041_v40 = vld [vmem:[%s1545_s26 + $0x8] sm:$0xff] }
  0x1a   : > { %v302_v55 = vand.u32 4294901760, %v301_v47  ;;  %1269 = vmatprep.mubr.f32.mxu0 %v320_v43  ;;  %v312_v56 = vand.u32 4294901760, %v311_v48  ;;  %1329 = vmatpush3.bf16.msra.mxu0 %v1326_v14  ;;  %v322_v59 = vand.u32 4294901760, %v321_v51  ;;  %v341_v60 = vsub.f32 %v1483_v44, %v340_v52  ;;  %v1043_v43 = vld [vmem:[%s1545_s26 + $0x18] sm:$0xff] }
  0x1b   : > { %1331 = vmatprep.subr.bf16.mxu0 %v1426_v4  ;;  %v332_v63 = vand.u32 4294901760, %v331_v57  ;;  %v351_v0 = vsub.f32 %v1486_v45, %v350_v53  ;;  %v370_v1 = vand.u32 4294901760, %v369_v61  ;;  %v361_v3 = vsub.f32 %v1493_v50, %v360_v58 }
  0x1c   : > { %1218 = vmatprep.mubr.f32.mxu1 %v302_v55  ;;  %v342_v2 = vand.u32 4294901760, %v341_v60  ;;  %v1051_v48 = vmul.f32 0.3, %v1043_v43 }
  0x1d   : > { %1219 = vmatmul.mubr.f32.vlgmr.msra.gmra.mrb[0].mxu1 %v312_v56  ;;  %1270 = vmatmul.mubr.f32.gmra.mrb[2].mxu0 %v330_v49  ;;  %v352_v7 = vand.u32 4294901760, %v351_v0  ;;  %v371_v5 = vsub.f32 %v369_v61, %v370_v1  ;;  %v362_v6 = vand.u32 4294901760, %v361_v3  ;;  %v1042_v49 = vld [vmem:[%s1545_s26 + $0x10] sm:$0xff] }
  0x1e   : > { %1317 = vmatpush3.bf16.msra.mxu1 %v1314_v32  ;;  %1221 = vmatprep.mubr.f32.mxu1 %v322_v59  ;;  %v1050_v57 = vmul.f32 0.3, %v1042_v49  ;;  %v1045_v59 = vld [vmem:[%s1545_s26 + $0x28] sm:$0xff] }
  0x1f   : > { %1272 = vmatprep.mubr.f32.mxu0 %v340_v52  ;;  %1319 = vmatprep.subr.bf16.mxu1 %v1318_v62  ;;  %v372_v8 = vand.u32 4294901760, %v371_v5  ;;  %v1044_v52 = vld [vmem:[%s1545_s26 + $0x20] sm:$0xff]  ;;  %v1047_v5 = vld [vmem:[%s1545_s26 + $0x38] sm:$0xff] }
  0x21   : > { %1222 = vmatmul.mubr.f32.gmra.mrb[2].mxu1 %v332_v63  ;;  %1273 = vmatmul.mubr.f32.gmra.mrb[4].mxu0 %v350_v53 }
  0x22   : > { %1224 = vmatprep.mubr.f32.mxu1 %v342_v2  ;;  %1275 = vmatprep.mubr.f32.mxu0 %v360_v58  ;;  %v1052_v58 = vmul.f32 0.3, %v1044_v52  ;;  %v1053_v2 = vmul.f32 0.3, %v1045_v59 }
  0x25   : > { %1225 = vmatmul.mubr.f32.gmra.mrb[4].mxu1 %v352_v7  ;;  %1276 = vmatmul.mubr.f32.gmra.mrb[6].mxu0 %v370_v1 }
  0x26   : > { %1227 = vmatprep.mubr.f32.mxu1 %v362_v6  ;;  %1282 = vmatprep.mubr.f32.mxu0 %v1449_v21 }
  0x29   : > { %1228 = vmatmul.mubr.f32.gmra.mrb[6].mxu1 %v372_v8  ;;  %1283 = vmatmul.mubr.f32.vlgmr.msra.gmra.mrb[0].mxu0 %v1451_v22 }
  0x2a   : > { %1234 = vmatprep.mubr.f32.mxu1 %v1449_v21  ;;  %1285 = vmatprep.mubr.f32.mxu0 %v1453_v26 }
  0x2b   : > { %1333 = vmatpush3.bf16.msra.mxu0 %v1426_v4 }
  0x2d   : > { %1235 = vmatmul.mubr.f32.vlgmr.msra.gmra.mrb[0].mxu1 %v1451_v22  ;;  %1286 = vmatmul.mubr.f32.gmra.mrb[2].mxu0 %v1464_v33 }
  0x2e   : > { %1321 = vmatpush3.bf16.msra.mxu1 %v1318_v62  ;;  %1237 = vmatprep.mubr.f32.mxu1 %v1453_v26 }
  0x2f   : > { %1288 = vmatprep.mubr.f32.mxu0 %v1469_v36 }
  0x31   : > { %1238 = vmatmul.mubr.f32.gmra.mrb[2].mxu1 %v1464_v33  ;;  %1289 = vmatmul.mubr.f32.gmra.mrb[4].mxu0 %v1471_v37 }
  0x32   : > { %1240 = vmatprep.mubr.f32.mxu1 %v1469_v36  ;;  %1291 = vmatprep.mubr.f32.mxu0 %v1479_v42 }
  0x35   : > { %1241 = vmatmul.mubr.f32.gmra.mrb[4].mxu1 %v1471_v37  ;;  %1292 = vmatmul.mubr.f32.gmra.mrb[6].mxu0 %v1498_v54 }
  0x36   : > { %1243 = vmatprep.mubr.f32.mxu1 %v1479_v42  ;;  %1298 = vmatprep.mubr.f32.mxu0 %v1449_v21 }
  0x39   : > { %1244 = vmatmul.mubr.f32.gmra.mrb[6].mxu1 %v1498_v54  ;;  %1299 = vmatmul.mubr.f32.vlgmr.msra.gmra.mrb[0].mxu0 %v1451_v22 }
  0x3a   : > { %1250 = vmatprep.mubr.f32.mxu1 %v1459_v30  ;;  %1301 = vmatprep.mubr.f32.mxu0 %v1453_v26 }
  0x3d   : > { %1251 = vmatmul.mubr.f32.vlgmr.msra.gmra.mrb[0].mxu1 %v1462_v31  ;;  %1302 = vmatmul.mubr.f32.gmra.mrb[2].mxu0 %v1464_v33 }
  0x3e   : > { %1253 = vmatprep.mubr.f32.mxu1 %v1467_v35  ;;  %1304 = vmatprep.mubr.f32.mxu0 %v1469_v36 }
  0x41   : > { %1254 = vmatmul.mubr.f32.gmra.mrb[2].mxu1 %v1477_v41  ;;  %1305 = vmatmul.mubr.f32.gmra.mrb[4].mxu0 %v1471_v37  ;;  %v1049_v41 = vmul.f32 0.3, %v1041_v40 }
  0x42   : > { %1256 = vmatprep.mubr.f32.mxu1 %v1483_v44  ;;  %1307 = vmatprep.mubr.f32.mxu0 %v1479_v42  ;;  %v1040_v42 = vld [vmem:[%s1545_s26] sm:$0xff] }
  0x43   : > { %v1048_v47 = vmul.f32 0.3, %v1040_v42 }
  0x45   : > { %1257 = vmatmul.mubr.f32.gmra.mrb[4].mxu1 %v1486_v45  ;;  %1308 = vmatmul.mubr.f32.gmra.mrb[6].mxu0 %v1498_v54 }
  0x46   : > { %1259 = vmatprep.mubr.f32.mxu1 %v1493_v50 }
  0x49   : > { %1260 = vmatmul.mubr.f32.gmra.mrb[6].mxu1 %v369_v61  ;;  %v1046_v61 = vld [vmem:[%s1545_s26 + $0x30] sm:$0xff] }
  0x4a   : > { %v1054_v7 = vmul.f32 0.3, %v1046_v61 }
 0x10c   : > { %v1300_v4 = vpop.f32.mrb[0].mxu0 }
 0x10d   : > { %v945_v9 = vpop.f32.mrb[1].mxu0 }
 0x110   : > { %v1252_v10 = vpop.f32.mrb[0].mxu1  ;;  %v1303_v11 = vpop.f32.mrb[2].mxu0 }
 0x111   : > { %v1334_v12 = vadd.f32 %v1300_v4, %v1252_v10  ;;  %v573_v13 = vpop.f32.mrb[1].mxu1  ;;  %v957_v14 = vpop.f32.mrb[3].mxu0 }
 0x112   : > { %v1335_v15 = vadd.f32 %v945_v9, %v573_v13 }
 0x113   : > { %v992_v16 = vmul.f32 0.7, %v1334_v12 }
 0x114   : > { %v1255_v17 = vpop.f32.mrb[2].mxu1  ;;  %v1306_v18 = vpop.f32.mrb[4].mxu0  ;;  %v991_v23 = vmul.f32 0.7, %v1335_v15 }
 0x115   : > { %v1336_v19 = vadd.f32 %v1303_v11, %v1255_v17  ;;  %v969_v20 = vpop.f32.mrb[5].mxu0  ;;  %1009 = vrot.lane.b32.xlu0 %v992_v16, %s1391_s23  ;;  %v587_v21 = vpop.f32.mrb[3].mxu1  ;;  %v1055_v11 = vmul.f32 0.3, %v1047_v5 }
 0x116   : > { %v1337_v22 = vadd.f32 %v957_v14, %v587_v21 }
 0x117   : > { %v994_v24 = vmul.f32 0.7, %v1336_v19 }
 0x118   : > { %v1258_v25 = vpop.f32.mrb[4].mxu1  ;;  %v1309_v26 = vpop.f32.mrb[6].mxu0  ;;  %v993_v31 = vmul.f32 0.7, %v1337_v22 }
 0x119   : > { %v1338_v27 = vadd.f32 %v1306_v18, %v1258_v25  ;;  %v981_v28 = vpop.f32.mrb[7].mxu0  ;;  %1007 = vrot.lane.b32.xlu0 %v991_v23, %s1391_s23  ;;  %1013 = vrot.lane.b32.xlu1 %v994_v24, %s1391_s23  ;;  %v601_v29 = vpop.f32.mrb[5].mxu1 }
 0x11a   : > { %v1339_v30 = vadd.f32 %v969_v20, %v601_v29 }
 0x11b   : > { %v996_v37 = vmul.f32 0.7, %v1338_v27 }
 0x11c   : > { %v995_v32 = vmul.f32 0.7, %v1339_v30  ;;  %v1261_v33 = vpop.f32.mrb[6].mxu1 }
 0x11d   : > { %v1340_v34 = vadd.f32 %v1309_v26, %v1261_v33  ;;  %1011 = vrot.lane.b32.xlu1 %v993_v31, %s1391_s23  ;;  %v615_v35 = vpop.f32.mrb[7].mxu1 }
 0x11e   : > { %v1341_v36 = vadd.f32 %v981_v28, %v615_v35  ;;  %1015 = vrot.lane.b32.xlu0 %v995_v32, %s1391_s23 }
 0x11f   : > { %v998_v39 = vmul.f32 0.7, %v1340_v34 }
 0x120   : > { %v997_v38 = vmul.f32 0.7, %v1341_v36 }
 0x121   : > { %1017 = vrot.lane.b32.xlu1 %v996_v37, %s1391_s23 }
 0x122   : > { %1019 = vrot.lane.b32.xlu0 %v997_v38, %s1391_s23 }
 0x125   : > { %1021 = vrot.lane.b32.xlu1 %v998_v39, %s1391_s23 }
 0x187   : > { %v1010_v44 = vpop.permute.xlu0 %1009 }
 0x188   : > { %v1033_v45 = vsel %vm1031_vm1, %v992_v16, %v1010_v44 }
 0x189   : > { %v1057_v46 = vadd.f32 %v1049_v41, %v1033_v45 }
 0x18b   : > { %1066 = vst.msk [vmem:[%s1554_s29 + $0x8] sm:$0xff] %vm1064_vm2, %v1057_v46  ;;  %v1008_v50 = vpop.permute.xlu0 %1007  ;;  %v1014_v51 = vpop.permute.xlu1 %1013 }
 0x18c   : > { %v1032_v53 = vsel %vm1031_vm1, %v991_v23, %v1008_v50  ;;  %v1035_v54 = vsel %vm1031_vm1, %v994_v24, %v1014_v51 }
 0x18d   : > { %v1056_v55 = vadd.f32 %v1048_v47, %v1032_v53  ;;  %v1059_v56 = vadd.f32 %v1051_v48, %v1035_v54 }
 0x18f   : > { %1065 = vst.msk [vmem:[%s1554_s29] sm:$0xff] %vm1064_vm2, %v1056_v55  ;;  %1068 = vst.msk [vmem:[%s1554_s29 + $0x18] sm:$0xff] %vm1064_vm2, %v1059_v56  ;;  %v1012_v60 = vpop.permute.xlu1 %1011 }
 0x190   : > { %v1034_v62 = vsel %vm1031_vm1, %v993_v31, %v1012_v60  ;;  %v1016_v63 = vpop.permute.xlu0 %1015 }
 0x191   : > { %v1058_v0 = vadd.f32 %v1050_v57, %v1034_v62  ;;  %v1036_v1 = vsel %vm1031_vm1, %v995_v32, %v1016_v63 }
 0x192   : > { %v1060_v3 = vadd.f32 %v1052_v58, %v1036_v1 }
 0x193   : > { %1067 = vst.msk [vmem:[%s1554_s29 + $0x10] sm:$0xff] %vm1064_vm2, %v1058_v0  ;;  %v1018_v6 = vpop.permute.xlu1 %1017 }
 0x194   : > { %1069 = vst.msk [vmem:[%s1554_s29 + $0x20] sm:$0xff] %vm1064_vm2, %v1060_v3  ;;  %v1037_v8 = vsel %vm1031_vm1, %v996_v37, %v1018_v6  ;;  %v1020_v4 = vpop.permute.xlu0 %1019 }
 0x195   : > { %v1061_v9 = vadd.f32 %v1053_v2, %v1037_v8  ;;  %v1038_v10 = vsel %vm1031_vm1, %v997_v38, %v1020_v4 }
 0x196   : > { %v1062_v12 = vadd.f32 %v1054_v7, %v1038_v10 }
 0x197   : > { %1070 = vst.msk [vmem:[%s1554_s29 + $0x28] sm:$0xff] %vm1064_vm2, %v1061_v9  ;;  %v1022_v13 = vpop.permute.xlu1 %1021 }
 0x198   : > { %1071 = vst.msk [vmem:[%s1554_s29 + $0x30] sm:$0xff] %vm1064_vm2, %v1062_v12  ;;  %v1039_v14 = vsel %vm1031_vm1, %v998_v39, %v1022_v13 }
 0x199   : > { %v1063_v15 = vadd.f32 %v1055_v11, %v1039_v14 }
 0x19b   : > { %1072 = vst.msk [vmem:[%s1554_s29 + $0x38] sm:$0xff] %vm1064_vm2, %v1063_v15 }
 0x19c PF: > { %s13_s12 = sadd.s32 1, %s1389_s12  }
 0x19d   : > { %p10_p4 = scmp.ge.s32.totalorder %s13_s12, 4  }
 0x19f   :  { %12 = sbr.rel (!%p10_p4) target bundleno = 1 (0x1), region = 65 }

</bundles_post_ra>
